<compile_context>
chip_gen: v5e
topology: v5e:2x2
jax: 0.10.0
libtpu: 0.0.40
codegen_flags: <defaults>
</compile_context>

<pallas_src>
import jax
import jax.numpy as jnp
from jax import lax
from jax.experimental import pallas as pl
from jax.experimental.pallas import tpu as pltpu

# ---- model dimensions (synthetic, small) -------------------------------------
OUTPUT_DIM = 64        # vocab size
EMB_DIM    = 32
ENC_HID    = 16        # bidirectional encoder => feature dim = 2*ENC_HID
DEC_HID    = 32
DROPOUT_P  = 0.1       # eval mode -> identity
ENC2       = 2 * ENC_HID

LANE    = 128                                          # TPU lane width
OUT_PAD = ((OUTPUT_DIM + LANE - 1) // LANE) * LANE     # fc_out cols padded to 128


def _full_spec(shape):
    nd = len(shape)
    return pl.BlockSpec(shape, lambda i, nd=nd: (0,) * nd)


def decoder_kernel(ids_ref, hid_ref, enc_ref, tbl_ref,
                   wa_h_ref, wa_e_ref, ba_ref, v_ref,
                   wih_e_ref, wih_w_ref, bih_ref, whh_ref, bhh_ref,
                   wfc_h_ref, wfc_w_ref, wfc_e_ref, bfc_ref,
                   pred_ref, hnew_ref):
    B, S, E2 = enc_ref.shape
    V, E = tbl_ref.shape
    Hd = whh_ref.shape[0]

    # ---- embedding lookup as one-hot @ table (MXU); dropout = eval identity ----
    # TODO(synk): training-mode dropout (pltpu.prng_*) not implemented (eval mode).
    ids = ids_ref[...]                                                    # [B,1] int32
    onehot = (ids == lax.broadcasted_iota(jnp.int32, (B, V), 1)).astype(jnp.float32)
    emb = jnp.dot(onehot, tbl_ref[...],
                  preferred_element_type=jnp.float32)                     # [B,E]

    h   = hid_ref[:, :Hd]                                                 # [B,Hd] (input is lane-padded)
    enc = enc_ref[...]                                                    # [B,S,E2]

    # ---- Bahdanau attention --------------------------------------------------
    # bias folded into the [B,Hd] hidden projection (one add, not one per S)
    hb = jnp.dot(h, wa_h_ref[...], preferred_element_type=jnp.float32) + ba_ref[...]
    # [B,S,E2] -> [B*S,E2] is layout-free here (E2 <= 128 lanes, S multiple of 8)
    enc_part = jnp.dot(enc.reshape(B * S, E2), wa_e_ref[...],
                       preferred_element_type=jnp.float32).reshape(B, S, Hd)
    energy = jnp.tanh(enc_part + hb[:, None, :])                          # [B,S,Hd]
    scores = jnp.sum(energy * v_ref[...][None, :, :], axis=-1)            # [B,S]
    m  = jnp.max(scores, axis=-1, keepdims=True)
    ex = jnp.exp(scores - m)
    a  = ex / jnp.sum(ex, axis=-1, keepdims=True)                         # [B,S]

    # weighted = bmm(a.unsqueeze(1), encoder_outputs): batched MXU contraction
    weighted = jnp.einsum('bqs,bse->bqe', a[:, None, :], enc,
                          preferred_element_type=jnp.float32).reshape(B, E2)

    # ---- single-step GRU cell (torch gate order r,z,n); split-weight matmuls --
    gi = (jnp.dot(emb, wih_e_ref[...], preferred_element_type=jnp.float32)
          + jnp.dot(weighted, wih_w_ref[...], preferred_element_type=jnp.float32)
          + bih_ref[...])                                                 # [B,3Hd]
    gh = jnp.dot(h, whh_ref[...], preferred_element_type=jnp.float32) + bhh_ref[...]
    r = jax.nn.sigmoid(gi[:, 0:Hd]          + gh[:, 0:Hd])
    z = jax.nn.sigmoid(gi[:, Hd:2 * Hd]     + gh[:, Hd:2 * Hd])
    n = jnp.tanh(      gi[:, 2 * Hd:3 * Hd] + r * gh[:, 2 * Hd:3 * Hd])
    h_new = (1.0 - z) * n + z * h                                         # [B,Hd]

    # ---- fc_out on cat(output, weighted, embedded): split-weight matmul sum ---
    pred = (jnp.dot(h_new, wfc_h_ref[...], preferred_element_type=jnp.float32)
            + jnp.dot(weighted, wfc_w_ref[...], preferred_element_type=jnp.float32)
            + jnp.dot(emb, wfc_e_ref[...], preferred_element_type=jnp.float32)
            + bfc_ref[...])                                               # [B,OUT_PAD]

    # lane-dense stores: both outputs are full 128-lane blocks
    pred_ref[...] = pred.astype(pred_ref.dtype)
    pad = hnew_ref.shape[1] - Hd
    if pad:
        h_out = jnp.concatenate([h_new, jnp.zeros((B, pad), jnp.float32)], axis=-1)
    else:
        h_out = h_new
    hnew_ref[...] = h_out.astype(hnew_ref.dtype)


@jax.jit
def decoder_forward(input_ids, hidden, encoder_outputs, params):
    B = input_ids.shape[0]
    Hd = DEC_HID

    ids2d   = input_ids.reshape(B, 1).astype(jnp.int32)
    hid_pad = jnp.pad(hidden, ((0, 0), (0, LANE - DEC_HID)))              # lane-dense + aliasable

    # weight splits / pads are compile-time constant-foldable under jit; in a
    # real decode loop pre-split & pre-pad once outside the loop.
    wa_h = params["wa"][:Hd, :]
    wa_e = params["wa"][Hd:, :]
    wih_e = params["wih"][:EMB_DIM, :]
    wih_w = params["wih"][EMB_DIM:, :]
    wfc_pad = jnp.pad(params["wfc"], ((0, 0), (0, OUT_PAD - OUTPUT_DIM)))
    wfc_h = wfc_pad[:Hd, :]
    wfc_w = wfc_pad[Hd:Hd + ENC2, :]
    wfc_e = wfc_pad[Hd + ENC2:, :]
    bfc_pad = jnp.pad(params["bfc"], ((0, 0), (0, OUT_PAD - OUTPUT_DIM)))

    args = (ids2d, hid_pad, encoder_outputs, params["embedding"],
            wa_h, wa_e, params["ba"], params["v"],
            wih_e, wih_w, params["bih"], params["whh"], params["bhh"],
            wfc_h, wfc_w, wfc_e, bfc_pad)

    out_shapes = (jax.ShapeDtypeStruct((B, OUT_PAD), jnp.float32),
                  jax.ShapeDtypeStruct((B, LANE), jnp.float32))

    pred_pad, hnew_pad = pl.pallas_call(
        decoder_kernel,
        out_shape=out_shapes,
        grid=(1,),
        in_specs=[_full_spec(a.shape) for a in args],
        out_specs=(_full_spec((B, OUT_PAD)), _full_spec((B, LANE))),
        input_output_aliases={1: 1},      # hidden (padded) updated in place
        compiler_params=pltpu.CompilerParams(dimension_semantics=("arbitrary",)),
    )(*args)

    return pred_pad[:, :OUTPUT_DIM], hnew_pad[:, :DEC_HID]


def init_params(key):
    ks = jax.random.split(key, 10)
    s = 0.1
    p = {}
    p["embedding"] = jax.random.normal(ks[0], (OUTPUT_DIM, EMB_DIM), jnp.float32) * s
    # attention.attn: Linear(Hd+2He -> Hd), stored transposed; rows = [hidden ; enc]
    p["wa"]  = jax.random.normal(ks[1], (DEC_HID + ENC2, DEC_HID), jnp.float32) * s
    p["ba"]  = jax.random.normal(ks[2], (1, DEC_HID), jnp.float32) * s
    # attention.v: Linear(Hd -> 1, bias=False)
    p["v"]   = jax.random.normal(ks[3], (1, DEC_HID), jnp.float32) * s
    # GRU weights (transposed): W_ih^T [E+2He, 3Hd], W_hh^T [Hd, 3Hd]
    p["wih"] = jax.random.normal(ks[4], (EMB_DIM + ENC2, 3 * DEC_HID), jnp.float32) * s
    p["whh"] = jax.random.normal(ks[5], (DEC_HID, 3 * DEC_HID), jnp.float32) * s
    p["bih"] = jax.random.normal(ks[6], (1, 3 * DEC_HID), jnp.float32) * s
    p["bhh"] = jax.random.normal(ks[7], (1, 3 * DEC_HID), jnp.float32) * s
    # fc_out: Linear(Hd + 2He + E -> OUTPUT_DIM), transposed
    p["wfc"] = jax.random.normal(ks[8], (DEC_HID + ENC2 + EMB_DIM, OUTPUT_DIM), jnp.float32) * s
    p["bfc"] = jax.random.normal(ks[9], (1, OUTPUT_DIM), jnp.float32) * s
    return p


def decoder_reference(input_ids, hidden, enc, p):
    """Pure-JAX reference mirroring the PyTorch forward (eval mode)."""
    Hd = DEC_HID
    emb = p["embedding"][input_ids]
    hid_part = hidden @ p["wa"][:Hd] + p["ba"][0]
    enc_part = jnp.einsum('bse,eh->bsh', enc, p["wa"][Hd:])
    energy = jnp.tanh(enc_part + hid_part[:, None, :])
    scores = jnp.einsum('bsh,h->bs', energy, p["v"][0])
    a = jax.nn.softmax(scores, axis=-1)
    weighted = jnp.einsum('bs,bse->be', a, enc)
    gi = jnp.concatenate([emb, weighted], axis=-1) @ p["wih"] + p["bih"][0]
    gh = hidden @ p["whh"] + p["bhh"][0]
    r = jax.nn.sigmoid(gi[:, :Hd] + gh[:, :Hd])
    z = jax.nn.sigmoid(gi[:, Hd:2 * Hd] + gh[:, Hd:2 * Hd])
    n = jnp.tanh(gi[:, 2 * Hd:] + r * gh[:, 2 * Hd:])
    h_new = (1 - z) * n + z * hidden
    pred = jnp.concatenate([h_new, weighted, emb], axis=-1) @ p["wfc"] + p["bfc"][0]
    return pred, h_new


if __name__ == "__main__":
    key = jax.random.PRNGKey(0)
    kp, ki, kh, ke = jax.random.split(key, 4)
    B, S = 8, 8          # B=8 fills the f32 (8,128) sublane tile

    params = init_params(kp)
    input_ids = jax.random.randint(ki, (B,), 0, OUTPUT_DIM, dtype=jnp.int32)
    hidden = jax.random.normal(kh, (B, DEC_HID), jnp.float32)
    encoder_outputs = jax.random.normal(ke, (B, S, ENC2), jnp.float32)

    pred, h_new = decoder_forward(input_ids, hidden, encoder_outputs, params)
    jax.block_until_ready((pred, h_new))

    ref_pred, ref_h = decoder_reference(input_ids, hidden, encoder_outputs, params)
    assert pred.shape == (B, OUTPUT_DIM) and h_new.shape == (B, DEC_HID)
    assert jnp.allclose(pred, ref_pred, atol=1e-3, rtol=1e-3), "prediction mismatch"
    assert jnp.allclose(h_new, ref_h, atol=1e-3, rtol=1e-3), "hidden mismatch"
    print("KERNEL_OK")
</pallas_src>

<mosaic_0001>
module attributes {stable_mosaic.version = 11 : i64} {
  func.func @decoder_kernel(%arg0: i32, %arg1: memref<8x1xi32, #tpu.memory_space<vmem>>, %arg2: memref<8x128xf32, #tpu.memory_space<vmem>>, %arg3: memref<8x8x32xf32, #tpu.memory_space<vmem>>, %arg4: memref<64x32xf32, #tpu.memory_space<vmem>>, %arg5: memref<32x32xf32, #tpu.memory_space<vmem>>, %arg6: memref<32x32xf32, #tpu.memory_space<vmem>>, %arg7: memref<1x32xf32, #tpu.memory_space<vmem>>, %arg8: memref<1x32xf32, #tpu.memory_space<vmem>>, %arg9: memref<32x96xf32, #tpu.memory_space<vmem>>, %arg10: memref<32x96xf32, #tpu.memory_space<vmem>>, %arg11: memref<1x96xf32, #tpu.memory_space<vmem>>, %arg12: memref<32x96xf32, #tpu.memory_space<vmem>>, %arg13: memref<1x96xf32, #tpu.memory_space<vmem>>, %arg14: memref<32x128xf32, #tpu.memory_space<vmem>>, %arg15: memref<32x128xf32, #tpu.memory_space<vmem>>, %arg16: memref<32x128xf32, #tpu.memory_space<vmem>>, %arg17: memref<1x128xf32, #tpu.memory_space<vmem>>, %arg18: memref<8x128xf32, #tpu.memory_space<vmem>>, %arg19: memref<8x128xf32, #tpu.memory_space<vmem>>) attributes {dimension_semantics = [#tpu.dimension_semantics<arbitrary>], iteration_bounds = array<i64: 1>, scalar_prefetch = 0 : i64, scratch_operands = 0 : i64, tpu.core_type = #tpu.core_type<tc>, window_params = [{pipeline_mode = #tpu.pipeline_mode<synchronous>, transform_indices = @transform_0, window_bounds = array<i64: 8, 1>}, {pipeline_mode = #tpu.pipeline_mode<synchronous>, transform_indices = @transform_1, window_bounds = array<i64: 8, 128>}, {pipeline_mode = #tpu.pipeline_mode<synchronous>, transform_indices = @transform_2, window_bounds = array<i64: 8, 8, 32>}, {pipeline_mode = #tpu.pipeline_mode<synchronous>, transform_indices = @transform_3, window_bounds = array<i64: 64, 32>}, {pipeline_mode = #tpu.pipeline_mode<synchronous>, transform_indices = @transform_4, window_bounds = array<i64: 32, 32>}, {pipeline_mode = #tpu.pipeline_mode<synchronous>, transform_indices = @transform_5, window_bounds = array<i64: 32, 32>}, {pipeline_mode = #tpu.pipeline_mode<synchronous>, transform_indices = @transform_6, window_bounds = array<i64: 1, 32>}, {pipeline_mode = #tpu.pipeline_mode<synchronous>, transform_indices = @transform_7, window_bounds = array<i64: 1, 32>}, {pipeline_mode = #tpu.pipeline_mode<synchronous>, transform_indices = @transform_8, window_bounds = array<i64: 32, 96>}, {pipeline_mode = #tpu.pipeline_mode<synchronous>, transform_indices = @transform_9, window_bounds = array<i64: 32, 96>}, {pipeline_mode = #tpu.pipeline_mode<synchronous>, transform_indices = @transform_10, window_bounds = array<i64: 1, 96>}, {pipeline_mode = #tpu.pipeline_mode<synchronous>, transform_indices = @transform_11, window_bounds = array<i64: 32, 96>}, {pipeline_mode = #tpu.pipeline_mode<synchronous>, transform_indices = @transform_12, window_bounds = array<i64: 1, 96>}, {pipeline_mode = #tpu.pipeline_mode<synchronous>, transform_indices = @transform_13, window_bounds = array<i64: 32, 128>}, {pipeline_mode = #tpu.pipeline_mode<synchronous>, transform_indices = @transform_14, window_bounds = array<i64: 32, 128>}, {pipeline_mode = #tpu.pipeline_mode<synchronous>, transform_indices = @transform_15, window_bounds = array<i64: 32, 128>}, {pipeline_mode = #tpu.pipeline_mode<synchronous>, transform_indices = @transform_16, window_bounds = array<i64: 1, 128>}, {pipeline_mode = #tpu.pipeline_mode<synchronous>, transform_indices = @transform_17, window_bounds = array<i64: 8, 128>}, {pipeline_mode = #tpu.pipeline_mode<synchronous>, transform_indices = @transform_18, window_bounds = array<i64: 8, 128>}]} {
    %c0 = arith.constant 0 : index
    %c0_0 = arith.constant 0 : index
    %0 = vector.load %arg1[%c0, %c0_0] : memref<8x1xi32, #tpu.memory_space<vmem>>, vector<8x1xi32>
    %1 = tpu.iota {dimensions = array<i32: 1>} : vector<8x64xi32>
    %2 = vector.broadcast %0 : vector<8x1xi32> to vector<8x64xi32>
    %3 = arith.cmpi eq, %2, %1 : vector<8x64xi32>
    %4 = arith.extui %3 : vector<8x64xi1> to vector<8x64xi32>
    %5 = arith.sitofp %4 : vector<8x64xi32> to vector<8x64xf32>
    %c0_1 = arith.constant 0 : index
    %c0_2 = arith.constant 0 : index
    %6 = vector.load %arg4[%c0_1, %c0_2] : memref<64x32xf32, #tpu.memory_space<vmem>>, vector<64x32xf32>
    %cst = arith.constant dense<0.000000e+00> : vector<8x32xf32>
    %7 = tpu.matmul %5, %6, %cst {dimension_numbers = #tpu.dot_dimension_numbers<[1], [0], [0], [1], [0, 0, 1, 1], [], []>} : vector<8x64xf32>, vector<64x32xf32>, vector<8x32xf32> -> vector<8x32xf32>
    %c0_3 = arith.constant 0 : index
    %c0_4 = arith.constant 0 : index
    %8 = vector.load %arg2[%c0_3, %c0_4] : memref<8x128xf32, #tpu.memory_space<vmem>>, vector<8x32xf32>
    %c0_5 = arith.constant 0 : index
    %c0_6 = arith.constant 0 : index
    %c0_7 = arith.constant 0 : index
    %9 = vector.load %arg3[%c0_5, %c0_6, %c0_7] : memref<8x8x32xf32, #tpu.memory_space<vmem>>, vector<8x8x32xf32>
    %c0_8 = arith.constant 0 : index
    %c0_9 = arith.constant 0 : index
    %10 = vector.load %arg5[%c0_8, %c0_9] : memref<32x32xf32, #tpu.memory_space<vmem>>, vector<32x32xf32>
    %cst_10 = arith.constant dense<0.000000e+00> : vector<8x32xf32>
    %11 = tpu.matmul %8, %10, %cst_10 {dimension_numbers = #tpu.dot_dimension_numbers<[1], [0], [0], [1], [0, 0, 1, 1], [], []>} : vector<8x32xf32>, vector<32x32xf32>, vector<8x32xf32> -> vector<8x32xf32>
    %c0_11 = arith.constant 0 : index
    %c0_12 = arith.constant 0 : index
    %12 = vector.load %arg7[%c0_11, %c0_12] : memref<1x32xf32, #tpu.memory_space<vmem>>, vector<1x32xf32>
    %13 = vector.broadcast %12 : vector<1x32xf32> to vector<8x32xf32>
    %14 = arith.addf %11, %13 : vector<8x32xf32>
    %15 = vector.shape_cast %9 : vector<8x8x32xf32> to vector<64x32xf32>
    %c0_13 = arith.constant 0 : index
    %c0_14 = arith.constant 0 : index
    %16 = vector.load %arg6[%c0_13, %c0_14] : memref<32x32xf32, #tpu.memory_space<vmem>>, vector<32x32xf32>
    %cst_15 = arith.constant dense<0.000000e+00> : vector<64x32xf32>
    %17 = tpu.matmul %15, %16, %cst_15 {dimension_numbers = #tpu.dot_dimension_numbers<[1], [0], [0], [1], [0, 0, 1, 1], [], []>} : vector<64x32xf32>, vector<32x32xf32>, vector<64x32xf32> -> vector<64x32xf32>
    %18 = vector.shape_cast %17 : vector<64x32xf32> to vector<8x8x32xf32>
    %19 = vector.shape_cast %14 : vector<8x32xf32> to vector<8x1x32xf32>
    %20 = vector.broadcast %19 : vector<8x1x32xf32> to vector<8x8x32xf32>
    %21 = arith.addf %18, %20 : vector<8x8x32xf32>
    %22 = math.tanh %21 : vector<8x8x32xf32>
    %c0_16 = arith.constant 0 : index
    %c0_17 = arith.constant 0 : index
    %23 = vector.load %arg8[%c0_16, %c0_17] : memref<1x32xf32, #tpu.memory_space<vmem>>, vector<1x32xf32>
    %24 = vector.shape_cast %23 : vector<1x32xf32> to vector<1x1x32xf32>
    %25 = vector.broadcast %24 : vector<1x1x32xf32> to vector<8x8x32xf32>
    %26 = arith.mulf %22, %25 : vector<8x8x32xf32>
    %cst_18 = arith.constant dense<0.000000e+00> : vector<8x8xf32>
    %27 = vector.multi_reduction <add>, %26, %cst_18 [2] : vector<8x8x32xf32> to vector<8x8xf32>
    %cst_19 = arith.constant dense<0xFF800000> : vector<8xf32>
    %28 = vector.multi_reduction <maximumf>, %27, %cst_19 [1] : vector<8x8xf32> to vector<8xf32>
    %29 = vector.shape_cast %28 : vector<8xf32> to vector<8x1xf32>
    %30 = vector.broadcast %29 : vector<8x1xf32> to vector<8x8xf32>
    %31 = arith.subf %27, %30 : vector<8x8xf32>
    %32 = math.exp %31 : vector<8x8xf32>
    %cst_20 = arith.constant dense<0.000000e+00> : vector<8xf32>
    %33 = vector.multi_reduction <add>, %32, %cst_20 [1] : vector<8x8xf32> to vector<8xf32>
    %34 = vector.shape_cast %33 : vector<8xf32> to vector<8x1xf32>
    %35 = vector.broadcast %34 : vector<8x1xf32> to vector<8x8xf32>
    %36 = arith.divf %32, %35 : vector<8x8xf32>
    %37 = vector.shape_cast %36 : vector<8x8xf32> to vector<8x1x8xf32>
    "tpu.trace_start"() <{level = 10 : i32, message = "bqs,bse->bqe"}> : () -> ()
    %cst_21 = arith.constant dense<0.000000e+00> : vector<8x1x32xf32>
    %38 = tpu.matmul %37, %9, %cst_21 {dimension_numbers = #tpu.dot_dimension_numbers<[2], [1], [1], [2], [0, 0, 0, 1, 1, 2], [0], [0]>} : vector<8x1x8xf32>, vector<8x8x32xf32>, vector<8x1x32xf32> -> vector<8x1x32xf32>
    "tpu.trace_stop"() : () -> ()
    %39 = vector.shape_cast %38 : vector<8x1x32xf32> to vector<8x32xf32>
    %c0_22 = arith.constant 0 : index
    %c0_23 = arith.constant 0 : index
    %40 = vector.load %arg9[%c0_22, %c0_23] : memref<32x96xf32, #tpu.memory_space<vmem>>, vector<32x96xf32>
    %cst_24 = arith.constant dense<0.000000e+00> : vector<8x96xf32>
    %41 = tpu.matmul %7, %40, %cst_24 {dimension_numbers = #tpu.dot_dimension_numbers<[1], [0], [0], [1], [0, 0, 1, 1], [], []>} : vector<8x32xf32>, vector<32x96xf32>, vector<8x96xf32> -> vector<8x96xf32>
    %c0_25 = arith.constant 0 : index
    %c0_26 = arith.constant 0 : index
    %42 = vector.load %arg10[%c0_25, %c0_26] : memref<32x96xf32, #tpu.memory_space<vmem>>, vector<32x96xf32>
    %cst_27 = arith.constant dense<0.000000e+00> : vector<8x96xf32>
    %43 = tpu.matmul %39, %42, %cst_27 {dimension_numbers = #tpu.dot_dimension_numbers<[1], [0], [0], [1], [0, 0, 1, 1], [], []>} : vector<8x32xf32>, vector<32x96xf32>, vector<8x96xf32> -> vector<8x96xf32>
    %44 = arith.addf %41, %43 : vector<8x96xf32>
    %c0_28 = arith.constant 0 : index
    %c0_29 = arith.constant 0 : index
    %45 = vector.load %arg11[%c0_28, %c0_29] : memref<1x96xf32, #tpu.memory_space<vmem>>, vector<1x96xf32>
    %46 = vector.broadcast %45 : vector<1x96xf32> to vector<8x96xf32>
    %47 = arith.addf %44, %46 : vector<8x96xf32>
    %c0_30 = arith.constant 0 : index
    %c0_31 = arith.constant 0 : index
    %48 = vector.load %arg12[%c0_30, %c0_31] : memref<32x96xf32, #tpu.memory_space<vmem>>, vector<32x96xf32>
    %cst_32 = arith.constant dense<0.000000e+00> : vector<8x96xf32>
    %49 = tpu.matmul %8, %48, %cst_32 {dimension_numbers = #tpu.dot_dimension_numbers<[1], [0], [0], [1], [0, 0, 1, 1], [], []>} : vector<8x32xf32>, vector<32x96xf32>, vector<8x96xf32> -> vector<8x96xf32>
    %c0_33 = arith.constant 0 : index
    %c0_34 = arith.constant 0 : index
    %50 = vector.load %arg13[%c0_33, %c0_34] : memref<1x96xf32, #tpu.memory_space<vmem>>, vector<1x96xf32>
    %51 = vector.broadcast %50 : vector<1x96xf32> to vector<8x96xf32>
    %52 = arith.addf %49, %51 : vector<8x96xf32>
    %53 = vector.extract_strided_slice %47 {offsets = [0, 0], sizes = [8, 32], strides = [1, 1]} : vector<8x96xf32> to vector<8x32xf32>
    %54 = vector.extract_strided_slice %52 {offsets = [0, 0], sizes = [8, 32], strides = [1, 1]} : vector<8x96xf32> to vector<8x32xf32>
    %55 = arith.addf %53, %54 : vector<8x32xf32>
    %56 = arith.negf %55 : vector<8x32xf32>
    %57 = math.exp %56 : vector<8x32xf32>
    %cst_35 = arith.constant 1.000000e+00 : f32
    %58 = vector.broadcast %cst_35 : f32 to vector<8x32xf32>
    %59 = arith.addf %58, %57 : vector<8x32xf32>
    %60 = arith.divf %58, %59 : vector<8x32xf32>
    %61 = vector.extract_strided_slice %47 {offsets = [0, 32], sizes = [8, 32], strides = [1, 1]} : vector<8x96xf32> to vector<8x32xf32>
    %62 = vector.extract_strided_slice %52 {offsets = [0, 32], sizes = [8, 32], strides = [1, 1]} : vector<8x96xf32> to vector<8x32xf32>
    %63 = arith.addf %61, %62 : vector<8x32xf32>
    %64 = arith.negf %63 : vector<8x32xf32>
    %65 = math.exp %64 : vector<8x32xf32>
    %cst_36 = arith.constant 1.000000e+00 : f32
    %66 = vector.broadcast %cst_36 : f32 to vector<8x32xf32>
    %67 = arith.addf %66, %65 : vector<8x32xf32>
    %68 = arith.divf %66, %67 : vector<8x32xf32>
    %69 = vector.extract_strided_slice %47 {offsets = [0, 64], sizes = [8, 32], strides = [1, 1]} : vector<8x96xf32> to vector<8x32xf32>
    %70 = vector.extract_strided_slice %52 {offsets = [0, 64], sizes = [8, 32], strides = [1, 1]} : vector<8x96xf32> to vector<8x32xf32>
    %71 = arith.mulf %60, %70 : vector<8x32xf32>
    %72 = arith.addf %69, %71 : vector<8x32xf32>
    %73 = math.tanh %72 : vector<8x32xf32>
    %cst_37 = arith.constant 1.000000e+00 : f32
    %74 = vector.broadcast %cst_37 : f32 to vector<8x32xf32>
    %75 = arith.subf %74, %68 : vector<8x32xf32>
    %76 = arith.mulf %75, %73 : vector<8x32xf32>
    %77 = arith.mulf %68, %8 : vector<8x32xf32>
    %78 = arith.addf %76, %77 : vector<8x32xf32>
    %c0_38 = arith.constant 0 : index
    %c0_39 = arith.constant 0 : index
    %79 = vector.load %arg14[%c0_38, %c0_39] : memref<32x128xf32, #tpu.memory_space<vmem>>, vector<32x128xf32>
    %cst_40 = arith.constant dense<0.000000e+00> : vector<8x128xf32>
    %80 = tpu.matmul %78, %79, %cst_40 {dimension_numbers = #tpu.dot_dimension_numbers<[1], [0], [0], [1], [0, 0, 1, 1], [], []>} : vector<8x32xf32>, vector<32x128xf32>, vector<8x128xf32> -> vector<8x128xf32>
    %c0_41 = arith.constant 0 : index
    %c0_42 = arith.constant 0 : index
    %81 = vector.load %arg15[%c0_41, %c0_42] : memref<32x128xf32, #tpu.memory_space<vmem>>, vector<32x128xf32>
    %cst_43 = arith.constant dense<0.000000e+00> : vector<8x128xf32>
    %82 = tpu.matmul %39, %81, %cst_43 {dimension_numbers = #tpu.dot_dimension_numbers<[1], [0], [0], [1], [0, 0, 1, 1], [], []>} : vector<8x32xf32>, vector<32x128xf32>, vector<8x128xf32> -> vector<8x128xf32>
    %83 = arith.addf %80, %82 : vector<8x128xf32>
    %c0_44 = arith.constant 0 : index
    %c0_45 = arith.constant 0 : index
    %84 = vector.load %arg16[%c0_44, %c0_45] : memref<32x128xf32, #tpu.memory_space<vmem>>, vector<32x128xf32>
    %cst_46 = arith.constant dense<0.000000e+00> : vector<8x128xf32>
    %85 = tpu.matmul %7, %84, %cst_46 {dimension_numbers = #tpu.dot_dimension_numbers<[1], [0], [0], [1], [0, 0, 1, 1], [], []>} : vector<8x32xf32>, vector<32x128xf32>, vector<8x128xf32> -> vector<8x128xf32>
    %86 = arith.addf %83, %85 : vector<8x128xf32>
    %c0_47 = arith.constant 0 : index
    %c0_48 = arith.constant 0 : index
    %87 = vector.load %arg17[%c0_47, %c0_48] : memref<1x128xf32, #tpu.memory_space<vmem>>, vector<1x128xf32>
    %88 = vector.broadcast %87 : vector<1x128xf32> to vector<8x128xf32>
    %89 = arith.addf %86, %88 : vector<8x128xf32>
    %c0_49 = arith.constant 0 : index
    %c0_50 = arith.constant 0 : index
    %90 = vector.load %arg18[%c0_49, %c0_50] : memref<8x128xf32, #tpu.memory_space<vmem>>, vector<8x128xf32>
    tpu.vector_store %arg18[%c0_49, %c0_50], %89 {strides = array<i32>} : memref<8x128xf32, #tpu.memory_space<vmem>>, vector<8x128xf32>,
    %cst_51 = arith.constant 0.000000e+00 : f32
    %91 = vector.broadcast %cst_51 : f32 to vector<8x96xf32>
    %92 = tpu.concatenate %78, %91 in 1 : vector<8x32xf32>, vector<8x96xf32> -> vector<8x128xf32>
    %c0_52 = arith.constant 0 : index
    %c0_53 = arith.constant 0 : index
    %93 = vector.load %arg19[%c0_52, %c0_53] : memref<8x128xf32, #tpu.memory_space<vmem>>, vector<8x128xf32>
    tpu.vector_store %arg19[%c0_52, %c0_53], %92 {strides = array<i32>} : memref<8x128xf32, #tpu.memory_space<vmem>>, vector<8x128xf32>,
    return
  }
  func.func @transform_0(%arg0: i32) -> (i32, i32) {
    %c0_i32 = arith.constant 0 : i32
    %c0_i32_0 = arith.constant 0 : i32
    %c0_i32_1 = arith.constant 0 : i32
    return %c0_i32, %c0_i32_0 : i32, i32
  }
  func.func @transform_1(%arg0: i32) -> (i32, i32) {
    %c0_i32 = arith.constant 0 : i32
    %c0_i32_0 = arith.constant 0 : i32
    %c0_i32_1 = arith.constant 0 : i32
    return %c0_i32, %c0_i32_0 : i32, i32
  }
  func.func @transform_2(%arg0: i32) -> (i32, i32, i32) {
    %c0_i32 = arith.constant 0 : i32
    %c0_i32_0 = arith.constant 0 : i32
    %c0_i32_1 = arith.constant 0 : i32
    %c0_i32_2 = arith.constant 0 : i32
    return %c0_i32, %c0_i32_0, %c0_i32_1 : i32, i32, i32
  }
  func.func @transform_3(%arg0: i32) -> (i32, i32) {
    %c0_i32 = arith.constant 0 : i32
    %c0_i32_0 = arith.constant 0 : i32
    %c0_i32_1 = arith.constant 0 : i32
    return %c0_i32, %c0_i32_0 : i32, i32
  }
  func.func @transform_4(%arg0: i32) -> (i32, i32) {
    %c0_i32 = arith.constant 0 : i32
    %c0_i32_0 = arith.constant 0 : i32
    %c0_i32_1 = arith.constant 0 : i32
    return %c0_i32, %c0_i32_0 : i32, i32
  }
  func.func @transform_5(%arg0: i32) -> (i32, i32) {
    %c0_i32 = arith.constant 0 : i32
    %c0_i32_0 = arith.constant 0 : i32
    %c0_i32_1 = arith.constant 0 : i32
    return %c0_i32, %c0_i32_0 : i32, i32
  }
  func.func @transform_6(%arg0: i32) -> (i32, i32) {
    %c0_i32 = arith.constant 0 : i32
    %c0_i32_0 = arith.constant 0 : i32
    %c0_i32_1 = arith.constant 0 : i32
    return %c0_i32, %c0_i32_0 : i32, i32
  }
  func.func @transform_7(%arg0: i32) -> (i32, i32) {
    %c0_i32 = arith.constant 0 : i32
    %c0_i32_0 = arith.constant 0 : i32
    %c0_i32_1 = arith.constant 0 : i32
    return %c0_i32, %c0_i32_0 : i32, i32
  }
  func.func @transform_8(%arg0: i32) -> (i32, i32) {
    %c0_i32 = arith.constant 0 : i32
    %c0_i32_0 = arith.constant 0 : i32
    %c0_i32_1 = arith.constant 0 : i32
    return %c0_i32, %c0_i32_0 : i32, i32
  }
  func.func @transform_9(%arg0: i32) -> (i32, i32) {
    %c0_i32 = arith.constant 0 : i32
    %c0_i32_0 = arith.constant 0 : i32
    %c0_i32_1 = arith.constant 0 : i32
    return %c0_i32, %c0_i32_0 : i32, i32
  }
  func.func @transform_10(%arg0: i32) -> (i32, i32) {
    %c0_i32 = arith.constant 0 : i32
    %c0_i32_0 = arith.constant 0 : i32
    %c0_i32_1 = arith.constant 0 : i32
    return %c0_i32, %c0_i32_0 : i32, i32
  }
  func.func @transform_11(%arg0: i32) -> (i32, i32) {
    %c0_i32 = arith.constant 0 : i32
    %c0_i32_0 = arith.constant 0 : i32
    %c0_i32_1 = arith.constant 0 : i32
    return %c0_i32, %c0_i32_0 : i32, i32
  }
  func.func @transform_12(%arg0: i32) -> (i32, i32) {
    %c0_i32 = arith.constant 0 : i32
    %c0_i32_0 = arith.constant 0 : i32
    %c0_i32_1 = arith.constant 0 : i32
    return %c0_i32, %c0_i32_0 : i32, i32
  }
  func.func @transform_13(%arg0: i32) -> (i32, i32) {
    %c0_i32 = arith.constant 0 : i32
    %c0_i32_0 = arith.constant 0 : i32
    %c0_i32_1 = arith.constant 0 : i32
    return %c0_i32, %c0_i32_0 : i32, i32
  }
  func.func @transform_14(%arg0: i32) -> (i32, i32) {
    %c0_i32 = arith.constant 0 : i32
    %c0_i32_0 = arith.constant 0 : i32
    %c0_i32_1 = arith.constant 0 : i32
    return %c0_i32, %c0_i32_0 : i32, i32
  }
  func.func @transform_15(%arg0: i32) -> (i32, i32) {
    %c0_i32 = arith.constant 0 : i32
    %c0_i32_0 = arith.constant 0 : i32
    %c0_i32_1 = arith.constant 0 : i32
    return %c0_i32, %c0_i32_0 : i32, i32
  }
  func.func @transform_16(%arg0: i32) -> (i32, i32) {
    %c0_i32 = arith.constant 0 : i32
    %c0_i32_0 = arith.constant 0 : i32
    %c0_i32_1 = arith.constant 0 : i32
    return %c0_i32, %c0_i32_0 : i32, i32
  }
  func.func @transform_17(%arg0: i32) -> (i32, i32) {
    %c0_i32 = arith.constant 0 : i32
    %c0_i32_0 = arith.constant 0 : i32
    %c0_i32_1 = arith.constant 0 : i32
    return %c0_i32, %c0_i32_0 : i32, i32
  }
  func.func @transform_18(%arg0: i32) -> (i32, i32) {
    %c0_i32 = arith.constant 0 : i32
    %c0_i32_0 = arith.constant 0 : i32
    %c0_i32_1 = arith.constant 0 : i32
    return %c0_i32, %c0_i32_0 : i32, i32
  }
}

</mosaic_0001>

<bundles_post_ra>
// kernel: decoder_forward.1
= control target key start
LH: loop header
LB: loop body
LE: loop exit
PB: predicated region body
PF: predicated region fallthrough
CT: control target
= control target key end

     0   :  { %s1650_s0 = inlined_call_operand.vmem [shape: s32[8,1], index: 0, kind: input, shape index: {}]   ;;  %s1651_s1 = inlined_call_operand.vmem [shape: f32[8,128], index: 1, kind: input, shape index: {}, may-alias: {1,18}]   ;;  %s1652_s2 = inlined_call_operand.vmem [shape: f32[8,8,32], index: 2, kind: input, shape index: {}]   ;;  %s1653_s3 = inlined_call_operand.vmem [shape: f32[64,32], index: 3, kind: input, shape index: {}]   ;;  %s1654_s4 = inlined_call_operand.vmem [shape: f32[32,32], index: 4, kind: input, shape index: {}]   ;;  %s1655_s5 = inlined_call_operand.vmem [shape: f32[32,32], index: 5, kind: input, shape index: {}]   ;;  %s1656_s6 = inlined_call_operand.vmem [shape: f32[1,32], index: 6, kind: input, shape index: {}]   ;;  %s1657_s7 = inlined_call_operand.vmem [shape: f32[1,32], index: 7, kind: input, shape index: {}]   ;;  %s1658_s8 = inlined_call_operand.vmem [shape: f32[32,96], index: 8, kind: input, shape index: {}]   ;;  %s1659_s9 = inlined_call_operand.vmem [shape: f32[32,96], index: 9, kind: input, shape index: {}]   ;;  %s1660_s10 = inlined_call_operand.vmem [shape: f32[1,96], index: 10, kind: input, shape index: {}]   ;;  %s1661_s11 = inlined_call_operand.vmem [shape: f32[32,96], index: 11, kind: input, shape index: {}]   ;;  %s1662_s12 = inlined_call_operand.vmem [shape: f32[1,96], index: 12, kind: input, shape index: {}]   ;;  %s1663_s13 = inlined_call_operand.vmem [shape: f32[32,128], index: 13, kind: input, shape index: {}]   ;;  %s1664_s14 = inlined_call_operand.vmem [shape: f32[32,128], index: 14, kind: input, shape index: {}]   ;;  %s1665_s15 = inlined_call_operand.vmem [shape: f32[32,128], index: 15, kind: input, shape index: {}]   ;;  %s1666_s16 = inlined_call_operand.vmem [shape: f32[1,128], index: 16, kind: input, shape index: {}]   ;;  %s1667_s17 = inlined_call_operand.hbm [shape: f32[8,128], index: 17, kind: output, shape index: {0}]   ;;  %s1668_s18 = inlined_call_operand.vmem [shape: f32[8,128], index: 18, kind: output, shape index: {1}, may-alias: {1,18}]  }
   0x1   :  { %1672 = sst [smem:[#allocation5_spill]] %s1650_s0 }
   0x2   :  { %1673 = sst [smem:[#allocation6_spill]] %s1651_s1 }
   0x3   :  { %1674 = sst [smem:[#allocation7_spill]] %s1652_s2 }
   0x4   :  { %v112_v0 = vld [vmem:[%s1654_s4 + $0x18] sm:$0xff]  ;;  %v111_v2 = vld [vmem:[%s1654_s4 + $0x10] sm:$0xff]  ;;  %v110_v4 = vld [vmem:[%s1654_s4 + $0x8] sm:$0xff]  ;;  %s1675_s28 = sld [smem:[#allocation7_spill]]  ;;  %vm117_vm0 = vcmask 261120  }
   0x5   :  { %v144_v1 = vld [vmem:[%s1655_s5 + $0x18] sm:$0xff]  ;;  %133 = vmatpush.msra.mxu1 %v112_v0  ;;  %v143_v3 = vld [vmem:[%s1655_s5 + $0x10] sm:$0xff]  ;;  %v142_v5 = vld [vmem:[%s1655_s5 + $0x8] sm:$0xff]  ;;  %s1676_s1 = sld [smem:[#allocation6_spill]] }
   0x6   :  { %1049 = vmatpush.msra.mxu2 %v144_v1  ;;  %v109_v6 = vld [vmem:[%s1654_s4] sm:$0xff] }
   0x7   :  { %134 = vmatpush.msra.mxu1 %v111_v2  ;;  %v141_v8 = vld [vmem:[%s1655_s5] sm:$0xff] }
   0x8   :  { %1050 = vmatpush.msra.mxu2 %v143_v3 }
   0x9   :  { %135 = vmatpush.msra.mxu1 %v110_v4 }
   0xa   :  { %v101_v7 = vld [vmem:[%s1675_s28] sm:$0xff]  ;;  %v1283_v10 = vld [vmem:[%s1675_s28 + $0x10] sm:$0xff]  ;;  %1051 = vmatpush.msra.mxu2 %v142_v5  ;;  %v102_v11 = vld [vmem:[%s1675_s28 + $0x8] sm:$0xff] }
   0xb   :  { %v1278_v9 = vld [vmem:[%s1676_s1] sm:$0xff]  ;;  %572 = vmatpush.msra.mxu3 %v101_v7 }
   0xd   :  { %599 = vmatpush.msrb.mxu3 %v102_v11 }
   0xe   :  { %24 = vsyncpa [#allocation3], 0  ;;  %136 = vmatpush.msra.mxu1 %v109_v6  ;;  %1052 = vmatpush.msra.mxu2 %v141_v8  ;;  %v1295_v12 = vld [vmem:[%s1675_s28 + $0x18] sm:$0xff]  ;;  %v106_v13 = vld [vmem:[%s1675_s28 + $0x28] sm:$0xff]  ;;  %vm302_vm1 = vcmask 1041409   ;;  %vm304_vm2 = vcmask 1042434  }
   0xf   :  { %1025 = vmatmul.msk.f32.vlgmr.msra.gmra.mxu1 %vm117_vm0, %v1278_v9  ;;  %1028 = vmatmul.msk.f32.vlgmr.msra.gmra.mxu2 %vm117_vm0, %v1283_v10  ;;  %v1306_v14 = vld [vmem:[%s1675_s28 + $0x20] sm:$0xff]  ;;  %v1315_v15 = vld [vmem:[%s1675_s28 + $0x30] sm:$0xff]  ;;  %v1322_v16 = vld [vmem:[%s1675_s28 + $0x38] sm:$0xff]  ;;  %vm306_vm3 = vcmask 1043459   ;;  %vm308_vm4 = vcmask 1044484   ;;  %vm310_vm5 = vcmask 1045509  }
  0x10   :  { %181 = vmatpush.msrb.mxu1 %v144_v1  ;;  %v1062_v17 = vld [vmem:[%s1656_s6] ss:$0 sm:$0xff]  ;;  %vm1671_vm6 = vcmask 1046534   ;;  %vm1670_vm7 = vcmask 1047559   ;;  %vm317_vm8 = vcmask 64512   ;;  %s1679_s24 = sld [smem:[#allocation5_spill]] }
  0x11   :  { %v1063_v30 = vld [vmem:[%s1657_s7] ss:$0 sm:$0xff]  ;;  %s1149_s19 = smov 64   ;;  %s1152_s23 = smov [#allocation2]  }
  0x12   :  { %182 = vmatpush.msrb.mxu1 %v143_v3 }
  0x14   :  { %183 = vmatpush.msrb.mxu1 %v142_v5 }
  0x16   :  { %184 = vmatpush.msrb.mxu1 %v141_v8 }
  0x17   :  { %1026 = vmatmul.msk.f32.vlgmr.msrb.gmra.mxu1 %vm117_vm0, %v101_v7  ;;  %1029 = vmatmul.msk.f32.gmra.mxu2 %vm117_vm0, %v1295_v12 }
  0x18   :  { %707 = vmatpush.msra.mxu1 %v106_v13 }
  0x1f   :  { %1027 = vmatmul.msk.f32.gmra.mxu1 %vm117_vm0, %v102_v11  ;;  %1030 = vmatmul.msk.f32.gmra.mxu2 %vm117_vm0, %v1306_v14 }
  0x27   :  { %1031 = vmatmul.msk.f32.gmra.mxu2 %vm117_vm0, %v106_v13 }
  0x2f   :  { %1032 = vmatmul.msk.f32.gmra.mxu2 %vm117_vm0, %v1315_v15 }
  0x37   :  { %1033 = vmatmul.msk.f32.gmra.mxu2 %vm117_vm0, %v1322_v16 }
  0x8c   :  { %v138_v18 = vpop.f32.mrf.mxu1 }
  0x8d   :  { %v139_v19 = vadd.f32 %v1062_v17, %v138_v18 }
  0x8f   :  { %v212_v20 = vrot.slane %v139_v19, 2  ;;  %v218_v22 = vperm.slane %v139_v19, 0  ;;  %v213_v25 = vrot.slane %v139_v19, 3  ;;  %v211_v28 = vrot.slane %v139_v19, 1 }
  0x90   :  { %v214_v35 = vrot.slane %v139_v19, 4  ;;  %v215_v49 = vrot.slane %v139_v19, 5  ;;  %v216_v58 = vrot.slane %v139_v19, 6  ;;  %v217_v1 = vrot.slane %v139_v19, 7 }
  0x91   :  { %v220_v21 = vperm.slane %v212_v20, 0  ;;  %v221_v29 = vperm.slane %v213_v25, 0  ;;  %v219_v31 = vperm.slane %v211_v28, 0  ;;  %v60_v19 = vlaneseq }
  0x92   :  { %v192_v23 = vpop.f32.mrf.mxu2  ;;  %v222_v42 = vperm.slane %v214_v35, 0  ;;  %v223_v53 = vperm.slane %v215_v49, 0  ;;  %v224_v60 = vperm.slane %v216_v58, 0  ;;  %v225_v3 = vperm.slane %v217_v1, 0 }
  0x93   :  { %v236_v24 = vadd.f32 %v220_v21, %v192_v23  ;;  %v1340_v23 = vand.u32 127, %v60_v19 }
  0x94   :  { %v186_v26 = vpop.f32.mrf.mxu1 }
  0x95   :  { %1067 = vtanh.f32 %v236_v24  ;;  %v234_v27 = vadd.f32 %v218_v22, %v186_v26 }
  0x97   :  { %1069 = vtanh.f32 %v234_v27 }
  0x9a   :  { %v195_v32 = vpop.f32.mrf.mxu2 }
  0x9b   :  { %v1068_v33 = vpop.eup %1067  ;;  %v237_v34 = vadd.f32 %v221_v29, %v195_v32 }
  0x9c   :  { %v189_v36 = vpop.f32.mrf.mxu1  ;;  %v256_v37 = vmul.f32 %v1068_v33, %v1063_v30 }
  0x9d   :  { %v1070_v38 = vpop.eup %1069  ;;  %1071 = vtanh.f32 %v237_v34  ;;  %v235_v39 = vadd.f32 %v219_v31, %v189_v36 }
  0x9e   :  { %v268_v40 = vsel %vm117_vm0, %v256_v37, 0.0  ;;  %v254_v41 = vmul.f32 %v1070_v38, %v1063_v30 }
  0x9f   :  { %1073 = vtanh.f32 %v235_v39  ;;  %269 = vadd.xlane.f32.xlu1 %v268_v40 }
  0xa0   :  { %v262_v43 = vsel %vm117_vm0, %v254_v41, 0.0 }
  0xa1   :  { %263 = vadd.xlane.f32.xlu0 %v262_v43 }
  0xa2   :  { %v198_v44 = vpop.f32.mrf.mxu2 }
  0xa3   :  { %v1072_v45 = vpop.eup %1071  ;;  %v238_v46 = vadd.f32 %v222_v42, %v198_v44  ;;  %v1147_v44 = vmov 0  }
  0xa4   :  { %v257_v47 = vmul.f32 %v1072_v45, %v1063_v30  ;;  %1061 = vset.pattern.permute.xlu2 %v1147_v44  ;;  %1060 = vset.pattern.permute.xlu1 %v1147_v44 }
  0xa5   :  { %v1074_v48 = vpop.eup %1073  ;;  %1075 = vtanh.f32 %v238_v46  ;;  %1059 = vset.pattern.permute.xlu0 %v1147_v44 }
  0xa6   :  { %v271_v50 = vsel %vm117_vm0, %v257_v47, 0.0  ;;  %v255_v51 = vmul.f32 %v1074_v48, %v1063_v30 }
  0xa7   :  { %272 = vadd.xlane.f32.xlu1 %v271_v50 }
  0xa8   :  { %v265_v52 = vsel %vm117_vm0, %v255_v51, 0.0 }
  0xa9   :  { %266 = vadd.xlane.f32.xlu0 %v265_v52 }
  0xaa   :  { %v201_v54 = vpop.f32.mrf.mxu2 }
  0xab   :  { %v1076_v55 = vpop.eup %1075  ;;  %v239_v56 = vadd.f32 %v223_v53, %v201_v54 }
  0xac   :  { %v258_v57 = vmul.f32 %v1076_v55, %v1063_v30 }
  0xad   :  { %1077 = vtanh.f32 %v239_v56 }
  0xae   :  { %v274_v59 = vsel %vm117_vm0, %v258_v57, 0.0 }
  0xaf   :  { %275 = vadd.xlane.f32.xlu2 %v274_v59 }
  0xb2   :  { %v204_v61 = vpop.f32.mrf.mxu2 }
  0xb3   :  { %v1078_v62 = vpop.eup %1077  ;;  %v240_v63 = vadd.f32 %v224_v60, %v204_v61 }
  0xb4   :  { %v259_v0 = vmul.f32 %v1078_v62, %v1063_v30 }
  0xb5   :  { %1079 = vtanh.f32 %v240_v63 }
  0xb6   :  { %v277_v2 = vsel %vm117_vm0, %v259_v0, 0.0 }
  0xb7   :  { %278 = vadd.xlane.f32.xlu2 %v277_v2 }
  0xba   :  { %v207_v4 = vpop.f32.mrf.mxu2 }
  0xbb   :  { %v1080_v5 = vpop.eup %1079  ;;  %v241_v6 = vadd.f32 %v225_v3, %v207_v4 }
  0xbc   :  { %v260_v7 = vmul.f32 %v1080_v5, %v1063_v30 }
  0xbd   :  { %1081 = vtanh.f32 %v241_v6 }
  0xbe   :  { %v280_v8 = vsel %vm117_vm0, %v260_v7, 0.0 }
  0xbf   :  { %281 = vadd.xlane.f32.xlu0 %v280_v8 }
  0xc3   :  { %v1082_v11 = vpop.eup %1081 }
  0xc4   :  { %v261_v13 = vmul.f32 %v1082_v11, %v1063_v30 }
  0xc6   :  { %v283_v17 = vsel %vm117_vm0, %v261_v13, 0.0 }
  0xc7   :  { %284 = vadd.xlane.f32.xlu1 %v283_v17 }
 0x112   :  { %v270_v20 = vpop.xlane.xlu1 %269 }
 0x113   :  { %v296_v28 = vperm.slane %v270_v20, %v1340_v23 }
 0x114   :  { %v264_v18 = vpop.xlane.xlu0 %263 }
 0x115   :  { %v294_v24 = vperm.slane %v264_v18, %v1340_v23 }
 0x11a   :  { %v273_v26 = vpop.xlane.xlu1 %272 }
 0x11b   :  { %v297_v33 = vperm.slane %v273_v26, %v1340_v23 }
 0x11c   :  { %v267_v22 = vpop.xlane.xlu0 %266 }
 0x11d   :  { %v295_v25 = vperm.slane %v267_v22, %v1340_v23 }
 0x11f   :  { %v303_v27 = vsel %vm302_vm1, %v295_v25, %v294_v24 }
 0x120   :  { %v305_v31 = vsel %vm304_vm2, %v296_v28, %v303_v27 }
 0x121   :  { %v307_v36 = vsel %vm306_vm3, %v297_v33, %v305_v31 }
 0x122   :  { %v276_v21 = vpop.xlane.xlu2 %275 }
 0x123   :  { %v298_v32 = vperm.slane %v276_v21, %v1340_v23 }
 0x125   :  { %v309_v37 = vsel %vm308_vm4, %v298_v32, %v307_v36 }
 0x12a   :  { %v279_v29 = vpop.xlane.xlu2 %278 }
 0x12b   :  { %v299_v34 = vperm.slane %v279_v29, %v1340_v23 }
 0x12d   :  { %v311_v40 = vsel %vm310_vm5, %v299_v34, %v309_v37 }
 0x132   :  { %v282_v30 = vpop.xlane.xlu0 %281 }
 0x133   :  { %v300_v35 = vperm.slane %v282_v30, %v1340_v23 }
 0x135   :  { %v313_v41 = vsel %vm1671_vm6, %v300_v35, %v311_v40 }
 0x13a   :  { %v285_v38 = vpop.xlane.xlu1 %284 }
 0x13b   :  { %v301_v39 = vperm.slane %v285_v38, %v1340_v23 }
 0x13d   :  { %v315_v42 = vsel %vm1670_vm7, %v301_v39, %v313_v41 }
 0x13e   :  { %v318_v43 = vsel %vm317_vm8, %v315_v42, -inf }
 0x13f   :  { %319 = vmax.xlane.f32.xlu2 %v318_v43 }
 0x1b2   :  { %v320_v45 = vpop.xlane.xlu2 %319 }
 0x1b3   :  { %v324_v46 = vperm.slane %v320_v45, 2  ;;  %v323_v47 = vperm.slane %v320_v45, 1  ;;  %v322_v48 = vperm.slane %v320_v45, 0  ;;  %v325_v52 = vperm.slane %v320_v45, 3 }
 0x1b4   :  { %v326_v53 = vperm.slane %v320_v45, 4  ;;  %v329_v54 = vperm.slane %v320_v45, 7  ;;  %v327_v62 = vperm.slane %v320_v45, 5  ;;  %v328_v0 = vperm.slane %v320_v45, 6 }
 0x1b5   :  { %v340_v49 = vsub.f32 %v270_v20, %v324_v46  ;;  %v339_v50 = vsub.f32 %v267_v22, %v323_v47  ;;  %v338_v51 = vsub.f32 %v264_v18, %v322_v48  ;;  %v341_v58 = vsub.f32 %v273_v26, %v325_v52 }
 0x1b6   :  { %v342_v59 = vsub.f32 %v276_v21, %v326_v53  ;;  %v345_v60 = vsub.f32 %v285_v38, %v329_v54  ;;  %v343_v5 = vsub.f32 %v279_v29, %v327_v62  ;;  %v344_v6 = vsub.f32 %v282_v30, %v328_v0 }
 0x1b7   :  { %v350_v55 = vmul.f32 1.442695, %v340_v49  ;;  %v348_v56 = vmul.f32 1.442695, %v339_v50  ;;  %v346_v57 = vmul.f32 1.442695, %v338_v51 }
 0x1b8   :  { %v352_v61 = vmul.f32 1.442695, %v341_v58  ;;  %v354_v63 = vmul.f32 1.442695, %v342_v59  ;;  %v360_v2 = vmul.f32 1.442695, %v345_v60 }
 0x1b9   :  { %1083 = vpow2.f32 %v350_v55  ;;  %v356_v7 = vmul.f32 1.442695, %v343_v5  ;;  %v358_v8 = vmul.f32 1.442695, %v344_v6 }
 0x1ba   :  { %1085 = vpow2.f32 %v348_v56 }
 0x1bb   :  { %1087 = vpow2.f32 %v346_v57 }
 0x1bc   :  { %1089 = vpow2.f32 %v352_v61 }
 0x1bd   :  { %1091 = vpow2.f32 %v354_v63 }
 0x1be   :  { %1093 = vpow2.f32 %v360_v2 }
 0x1bf   :  { %v1358_v1 = vpop.eup %1083  ;;  %1095 = vpow2.f32 %v356_v7 }
 0x1c0   :  { %v1360_v3 = vpop.eup %1085  ;;  %377 = vperm.xlu2 %1061, %v1358_v1   ;;  %1097 = vpow2.f32 %v358_v8 }
 0x1c1   :  { %v1363_v4 = vpop.eup %1087  ;;  %374 = vperm.xlu1 %1060, %v1360_v3  }
 0x1c2   :  { %371 = vperm.xlu0 %1059, %v1363_v4   ;;  %v1367_v11 = vpop.eup %1089 }
 0x1c3   :  { %v1369_v13 = vpop.eup %1091 }
 0x1c4   :  { %v1372_v17 = vpop.eup %1093 }
 0x1c5   :  { %v1376_v18 = vpop.eup %1095 }
 0x1c6   :  { %v1378_v20 = vpop.eup %1097 }
 0x1c8   :  { %380 = vperm.xlu2 %1061, %v1367_v11  }
 0x1c9   :  { %383 = vperm.xlu1 %1060, %v1369_v13  }
 0x1ca   :  { %392 = vperm.xlu0 %1059, %v1372_v17  }
 0x1d0   :  { %386 = vperm.xlu2 %1061, %v1376_v18  }
 0x1d1   :  { %389 = vperm.xlu1 %1060, %v1378_v20  }
 0x21a   :  { %v378_v19 = vpop.permute.xlu2 %377 }
 0x21b   :  { %v396_v29 = vperm.slane %v378_v19, %v1340_v23 }
 0x222   :  { %v381_v24 = vpop.permute.xlu2 %380 }
 0x223   :  { %v397_v32 = vperm.slane %v381_v24, %v1340_v23 }
 0x22a   :  { %v387_v33 = vpop.permute.xlu2 %386 }
 0x22b   :  { %v399_v37 = vperm.slane %v387_v33, %v1340_v23 }
 0x233   :  { %v375_v21 = vpop.permute.xlu1 %374 }
 0x234   :  { %v372_v22 = vpop.permute.xlu0 %371  ;;  %v395_v25 = vperm.slane %v375_v21, %v1340_v23 }
 0x235   :  { %v394_v26 = vperm.slane %v372_v22, %v1340_v23 }
 0x237   :  { %v402_v27 = vsel %vm302_vm1, %v395_v25, %v394_v26 }
 0x238   :  { %v403_v30 = vsel %vm304_vm2, %v396_v29, %v402_v27 }
 0x239   :  { %v404_v34 = vsel %vm306_vm3, %v397_v32, %v403_v30 }
 0x23b   :  { %v384_v28 = vpop.permute.xlu1 %383 }
 0x23c   :  { %v398_v31 = vperm.slane %v384_v28, %v1340_v23  ;;  %v393_v36 = vpop.permute.xlu0 %392 }
 0x23d   :  { %v401_v40 = vperm.slane %v393_v36, %v1340_v23 }
 0x23e   :  { %v405_v35 = vsel %vm308_vm4, %v398_v31, %v404_v34 }
 0x23f   :  { %v406_v41 = vsel %vm310_vm5, %v399_v37, %v405_v35 }
 0x243   :  { %v390_v38 = vpop.permute.xlu1 %389 }
 0x244   :  { %v400_v39 = vperm.slane %v390_v38, %v1340_v23 }
 0x246   :  { %v407_v42 = vsel %vm1671_vm6, %v400_v39, %v406_v41 }
 0x247   :  { %v408_v43 = vsel %vm1670_vm7, %v401_v40, %v407_v42 }
 0x248   :  { %v410_v44 = vsel %vm317_vm8, %v408_v43, 0.0 }
 0x249   :  { %411 = vadd.xlane.f32.xlu2 %v410_v44 }
 0x2bc   :  { %v412_v45 = vpop.xlane.xlu2 %411 }
 0x2bd   :  { %v414_v46 = vperm.slane %v412_v45, 0  ;;  %v415_v47 = vperm.slane %v412_v45, 1  ;;  %v1398_v48 = vperm.slane %v412_v45, 2  ;;  %v1400_v49 = vperm.slane %v412_v45, 3 }
 0x2be   :  { %v1402_v50 = vperm.slane %v412_v45, 4  ;;  %v1407_v51 = vperm.slane %v412_v45, 5  ;;  %v1409_v53 = vperm.slane %v412_v45, 6  ;;  %v1413_v57 = vperm.slane %v412_v45, 7 }
 0x2bf   :  { %1099 = vrcp.f32 %v414_v46  ;;  %v454_v59 = vand.u32 2147483647, %v415_v47  ;;  %v456_v61 = vand.u32 2147483648, %v415_v47  ;;  %v439_v5 = vand.u32 2147483647, %v414_v46 }
 0x2c0   :  { %1101 = vrcp.f32 %v415_v47  ;;  %v441_v6 = vand.u32 2147483648, %v414_v46  ;;  %vm450_vm10 = vweird.f32 %v415_v47  ;;  %vm435_vm13 = vweird.f32 %v414_v46 }
 0x2c1   :  { %1103 = vrcp.f32 %v1398_v48  ;;  %vm1427_vm12 = vcmp.eq.f32.partialorder %v454_v59, 8.507059e+37  ;;  %v457_v28 = vor.u32 1.1754944e-38, %v456_v61  ;;  %vm440_vm15 = vcmp.eq.f32.partialorder %v439_v5, 8.507059e+37 }
 0x2c2   :  { %1105 = vrcp.f32 %v1400_v49  ;;  %v442_v29 = vor.u32 1.1754944e-38, %v441_v6  ;;  %v471_v37 = vand.u32 2147483648, %v1398_v48  ;;  %v469_v41 = vand.u32 2147483647, %v1398_v48 }
 0x2c3   :  { %1107 = vrcp.f32 %v1402_v50  ;;  %v486_v59 = vand.u32 2147483648, %v1400_v49  ;;  %v484_v5 = vand.u32 2147483647, %v1400_v49  ;;  %v501_v6 = vand.u32 2147483648, %v1402_v50 }
 0x2c4   :  { %1109 = vrcp.f32 %v1407_v51 }
 0x2c5   :  { %v1100_v52 = vpop.eup %1099  ;;  %1111 = vrcp.f32 %v1409_v53  ;;  %v502_v24 = vor.u32 1.1754944e-38, %v501_v6  ;;  %v768_v6 = vld [vmem:[%s1658_s8 + $0x10] sm:$0xff] }
 0x2c6   :  { %v1102_v54 = vpop.eup %1101  ;;  %v431_v55 = vmul.f32 %v1100_v52, %v414_v46  ;;  %vm436_vm9 = vweird.f32 %v1100_v52  ;;  %1113 = vrcp.f32 %v1413_v57  ;;  %v74_v46 = vld [vmem:[%s1653_s3 + $0x30] sm:$0xff] }
 0x2c7   :  { %v1411_v56 = vpop.eup %1103  ;;  %v446_v58 = vmul.f32 %v1102_v54, %v415_v47  ;;  %vm451_vm11 = vweird.f32 %v1102_v54  ;;  %vm437_vm14 = vmor %vm435_vm13, %vm436_vm9  ;;  %vm465_vm9 = vweird.f32 %v1398_v48  ;;  %v472_v47 = vor.u32 1.1754944e-38, %v471_v37 }
 0x2c8   :  { %v1415_v60 = vpop.eup %1105  ;;  %v432_v62 = vsub.f32 1.0, %v431_v55  ;;  %v461_v63 = vmul.f32 %v1411_v56, %v1398_v48  ;;  %vm452_vm7 = vmor %vm450_vm10, %vm451_vm11  ;;  %vm466_vm6 = vweird.f32 %v1411_v56 }
 0x2c9   :  { %v1420_v0 = vpop.eup %1107  ;;  %v447_v2 = vsub.f32 1.0, %v446_v58  ;;  %v476_v19 = vmul.f32 %v1415_v60, %v1400_v49  ;;  %vm467_vm10 = vmor %vm465_vm9, %vm466_vm6  ;;  %vm470_vm6 = vcmp.eq.f32.partialorder %v469_v41, 8.507059e+37  ;;  %vm485_vm9 = vcmp.eq.f32.partialorder %v484_v5, 8.507059e+37 }
 0x2ca   :  { %v433_v7 = vmul.f32 %v1100_v52, %v432_v62  ;;  %v462_v8 = vsub.f32 1.0, %v461_v63  ;;  %v491_v22 = vmul.f32 %v1420_v0, %v1402_v50  ;;  %v1432_v30 = vpop.eup %1109  ;;  %vm496_vm11 = vweird.f32 %v1420_v0 }
 0x2cb   :  { %v448_v21 = vmul.f32 %v1102_v54, %v447_v2  ;;  %v477_v33 = vsub.f32 1.0, %v476_v19  ;;  %v1436_v34 = vpop.eup %1111  ;;  %v506_v48 = vmul.f32 %v1432_v30, %v1407_v51  ;;  %v59_v2 = vld [vmem:[%s1679_s24] sm:$0xff]  ;;  %s1008_s24 = sshll.u32 %s1152_s23, 4  ;;  %s1009_s24 = int_to_ptr.vmem [resolvable:$true] %s1008_s24 }
 0x2cc   :  { %v434_v25 = vadd.f32 %v1100_v52, %v433_v7  ;;  %v463_v26 = vmul.f32 %v1411_v56, %v462_v8  ;;  %v492_v38 = vsub.f32 1.0, %v491_v22  ;;  %v521_v45 = vmul.f32 %v1436_v34, %v1409_v53  ;;  %v1464_v58 = vpop.eup %1113 }
 0x2cd   :  { %v449_v27 = vadd.f32 %v1102_v54, %v448_v21  ;;  %v478_v44 = vmul.f32 %v1415_v60, %v477_v33  ;;  %v507_v62 = vsub.f32 1.0, %v506_v48  ;;  %v499_v7 = vand.u32 2147483647, %v1402_v50 }
 0x2ce   :  { %v438_v31 = vsel %vm437_vm14, %v1100_v52, %v434_v25  ;;  %v464_v32 = vadd.f32 %v1411_v56, %v463_v26  ;;  %v73_v52 = vld [vmem:[%s1653_s3 + $0x28] sm:$0xff]  ;;  %vm495_vm14 = vweird.f32 %v1402_v50  ;;  %v536_v19 = vmul.f32 %v1464_v58, %v1413_v57 }
 0x2cf   :  { %v453_v35 = vsel %vm452_vm7, %v1102_v54, %v449_v27  ;;  %v443_v36 = vsel %vm440_vm15, %v442_v29, %v438_v31  ;;  %v479_v55 = vadd.f32 %v1415_v60, %v478_v44  ;;  %vm481_vm7 = vweird.f32 %v1415_v60  ;;  %vm497_vm15 = vmor %vm495_vm14, %vm496_vm11 }
 0x2d0   :  { %v458_v39 = vsel %vm1427_vm12, %v457_v28, %v453_v35  ;;  %v444_v40 = vmul.f32 %v1363_v4, %v443_v36  ;;  %v468_v43 = vsel %vm467_vm10, %v1411_v56, %v464_v32  ;;  %v75_v4 = vld [vmem:[%s1653_s3 + $0x38] sm:$0xff]  ;;  %v522_v56 = vsub.f32 1.0, %v521_v45  ;;  %v69_v45 = vld [vmem:[%s1653_s3 + $0x8] sm:$0xff] }
 0x2d1   :  { %v459_v42 = vmul.f32 %v1360_v3, %v458_v39  ;;  %v493_v3 = vmul.f32 %v1420_v0, %v492_v38  ;;  %88 = vmatpush.msra.mxu0 %v75_v4  ;;  %v473_v54 = vsel %vm470_vm6, %v472_v47, %v468_v43  ;;  %vm480_vm12 = vweird.f32 %v1400_v49 }
 0x2d2   :  { %552 = vperm.xlu1 %1060, %v444_v40   ;;  %v474_v63 = vmul.f32 %v1358_v1, %v473_v54  ;;  %vm482_vm13 = vmor %vm480_vm12, %vm481_vm7  ;;  %v523_v1 = vmul.f32 %v1436_v34, %v522_v56  ;;  %v487_v21 = vor.u32 1.1754944e-38, %v486_v59  ;;  %v508_v22 = vmul.f32 %v1432_v30, %v507_v62  ;;  %v849_v59 = vld [vmem:[%s1661_s11 + $0x18] sm:$0xff]  ;;  %v846_v62 = vld [vmem:[%s1661_s11] sm:$0xff] }
 0x2d3   :  { %579 = vperm.xlu0 %1059, %v459_v42   ;;  %89 = vmatpush.msra.mxu0 %v74_v46  ;;  %v494_v61 = vadd.f32 %v1420_v0, %v493_v3  ;;  %v483_v8 = vsel %vm482_vm13, %v1415_v60, %v479_v55  ;;  %vm500_vm10 = vcmp.eq.f32.partialorder %v499_v7, 8.507059e+37  ;;  %vm526_vm6 = vweird.f32 %v1436_v34 }
 0x2d4   :  { %v488_v25 = vsel %vm485_vm9, %v487_v21, %v483_v8  ;;  %v524_v26 = vadd.f32 %v1436_v34, %v523_v1  ;;  %v537_v60 = vsub.f32 1.0, %v536_v19  ;;  %v531_v27 = vand.u32 2147483648, %v1409_v53  ;;  %v972_v19 = vld [vmem:[%s1665_s15 + $0x18] sm:$0xff]  ;;  %v971_v21 = vld [vmem:[%s1665_s15 + $0x10] sm:$0xff] }
 0x2d5   :  { %90 = vmatpush.msra.mxu0 %v73_v52  ;;  %v498_v49 = vsel %vm497_vm15, %v1420_v0, %v494_v61  ;;  %v509_v28 = vadd.f32 %v1432_v30, %v508_v22  ;;  %vm511_vm7 = vweird.f32 %v1432_v30  ;;  %v489_v0 = vmul.f32 %v1367_v11, %v488_v25  ;;  %v766_v22 = vld [vmem:[%s1658_s8] sm:$0xff]  ;;  %v773_v25 = vld [vmem:[%s1659_s9 + $0x18] sm:$0xff] }
 0x2d6   :  { %v503_v50 = vsel %vm500_vm10, %v502_v24, %v498_v49  ;;  %vm525_vm11 = vweird.f32 %v1409_v53  ;;  %v529_v29 = vand.u32 2147483647, %v1409_v53  ;;  %v516_v31 = vand.u32 2147483648, %v1407_v51  ;;  %v970_v49 = vld [vmem:[%s1665_s15 + $0x8] sm:$0xff]  ;;  %v969_v24 = vld [vmem:[%s1665_s15] sm:$0xff]  ;;  %810 = vmatpush.msrb.mxu1 %v773_v25 }
 0x2d7   :  { %v504_v32 = vmul.f32 %v1369_v13, %v503_v50  ;;  %vm527_vm12 = vmor %vm525_vm11, %vm526_vm6  ;;  %vm510_vm13 = vweird.f32 %v1407_v51  ;;  %v514_v33 = vand.u32 2147483647, %v1407_v51  ;;  %v538_v36 = vmul.f32 %v1464_v58, %v537_v60  ;;  %v772_v50 = vld [vmem:[%s1659_s9 + $0x10] sm:$0xff] }
 0x2d8   :  { %v528_v35 = vsel %vm527_vm12, %v1436_v34, %v524_v26  ;;  %vm512_vm14 = vmor %vm510_vm13, %vm511_vm7  ;;  %v532_v11 = vor.u32 1.1754944e-38, %v531_v27  ;;  %vm530_vm15 = vcmp.eq.f32.partialorder %v529_v29, 8.507059e+37  ;;  %v517_v53 = vor.u32 1.1754944e-38, %v516_v31  ;;  %811 = vmatpush.msrb.mxu1 %v772_v50  ;;  %v771_v27 = vld [vmem:[%s1659_s9 + $0x8] sm:$0xff]  ;;  %v922_v29 = vld [vmem:[%s1664_s14 + $0x10] sm:$0xff] }
 0x2d9   :  { %v513_v37 = vsel %vm512_vm14, %v1432_v30, %v509_v28  ;;  %vm515_vm9 = vcmp.eq.f32.partialorder %v514_v33, 8.507059e+37  ;;  %v539_v39 = vadd.f32 %v1464_v58, %v538_v36  ;;  %vm541_vm10 = vweird.f32 %v1464_v58  ;;  %v770_v28 = vld [vmem:[%s1659_s9] sm:$0xff] }
 0x2da   :  { %606 = vperm.xlu1 %1060, %v474_v63   ;;  %v533_v38 = vsel %vm530_vm15, %v532_v11, %v528_v35  ;;  %v518_v13 = vsel %vm515_vm9, %v517_v53, %v513_v37  ;;  %v546_v51 = vand.u32 2147483648, %v1413_v57  ;;  %vm540_vm6 = vweird.f32 %v1413_v57  ;;  %812 = vmatpush.msrb.mxu1 %v771_v27  ;;  %v920_v33 = vld [vmem:[%s1664_s14] sm:$0xff] }
 0x2db   :  { %63 = vperm.xlu0 %1059, %v59_v2   ;;  %v534_v34 = vmul.f32 %v1378_v20, %v533_v38  ;;  %v544_v40 = vand.u32 2147483647, %v1413_v57  ;;  %v519_v41 = vmul.f32 %v1376_v18, %v518_v13  ;;  %vm542_vm7 = vmor %vm540_vm6, %vm541_vm10  ;;  %v72_v20 = vld [vmem:[%s1653_s3 + $0x20] sm:$0xff]  ;;  %v71_v18 = vld [vmem:[%s1653_s3 + $0x18] sm:$0xff]  ;;  %vm76_vm12 = vcmask 523264  }
 0x2dc   :  { %v543_v30 = vsel %vm542_vm7, %v1464_v58, %v539_v39  ;;  %v547_v42 = vor.u32 1.1754944e-38, %v546_v51  ;;  %91 = vmatpush.msra.mxu0 %v72_v20  ;;  %v70_v57 = vld [vmem:[%s1653_s3 + $0x10] sm:$0xff]  ;;  %v1148_v54 = vmov 0.0   ;;  %813 = vmatpush.msrb.mxu1 %v770_v28 }
 0x2dd   :  { %vm545_vm11 = vcmp.eq.f32.partialorder %v544_v40, 8.507059e+37 }
 0x2de   :  { %v548_v43 = vsel %vm545_vm11, %v547_v42, %v543_v30  ;;  %92 = vmatpush.msra.mxu0 %v71_v18  ;;  %v1064_v42 = vld [vmem:[%s1662_s12] ss:$0 sm:$0xff]  ;;  %s1150_s12 = smov 32  }
 0x2df   :  { %v549_v44 = vmul.f32 %v1372_v17, %v548_v43  ;;  %v68_v17 = vld [vmem:[%s1653_s3] sm:$0xff] }
 0x2e0   :  { %93 = vmatpush.msra.mxu0 %v70_v57 }
 0x2e2   :  { %633 = vperm.xlu1 %1060, %v489_v0   ;;  %94 = vmatpush.msra.mxu0 %v69_v45  ;;  %v923_v0 = vld [vmem:[%s1664_s14 + $0x18] sm:$0xff] }
 0x2e3   :  { %660 = vperm.xlu0 %1059, %v504_v32   ;;  %v921_v32 = vld [vmem:[%s1664_s14 + $0x8] sm:$0xff] }
 0x2e4   :  { %95 = vmatpush.msra.mxu0 %v68_v17 }
 0x2e6   :  { %680 = vmatpush.msrb.mxu0 %v1306_v14 }
 0x2ea   :  { %714 = vperm.xlu1 %1060, %v534_v34  }
 0x2eb   :  { %687 = vperm.xlu0 %1059, %v519_v41  }
 0x2f2   :  { %741 = vperm.xlu1 %1060, %v549_v44  }
 0x344   :  { %v553_v4 = vpop.permute.xlu1 %552 }
 0x345   :  { %v580_v46 = vpop.permute.xlu0 %579  ;;  %v554_v47 = vperm.slane %v553_v4, %v1340_v23 }
 0x346   :  { %v581_v48 = vperm.slane %v580_v46, %v1340_v23 }
 0x347   :  { %1034 = vmatmul.msk.f32.vlgmr.msra.gmra.mxu3 %vm317_vm8, %v554_v47  ;;  %v1065_v47 = vld [vmem:[%s1660_s10] ss:$0 sm:$0xff]  ;;  %s1151_s10 = smov 96  }
 0x348   :  { %626 = vmatpush.msra.mxu3 %v1283_v10 }
 0x34c   :  { %v607_v3 = vpop.permute.xlu1 %606 }
 0x34d   :  { %v64_v52 = vpop.permute.xlu0 %63  ;;  %v608_v56 = vperm.slane %v607_v3, %v1340_v23 }
 0x34e   :  { %vm65_vm13 = vcmp.eq.s32.totalorder %v64_v52, %v1340_v23 }
 0x34f   :  { %v1023_v55 = vsel %vm65_vm13, 1.0, %v1148_v54  ;;  %1035 = vmatmul.msk.f32.vlgmr.msrb.gmra.mxu3 %vm317_vm8, %v581_v48 }
 0x350   :  { %1024 = vmatmul.msk.f32.vlgmr.msra.gmra.mxu0 %vm76_vm12, %v1023_v55  ;;  %653 = vmatpush.msrb.mxu3 %v1295_v12  ;;  %v848_v12 = vld [vmem:[%s1661_s11 + $0x10] sm:$0xff] }
 0x351   :  { %761 = vmatpush.msra.mxu0 %v1322_v16  ;;  %v847_v16 = vld [vmem:[%s1661_s11 + $0x8] sm:$0xff]  ;;  %s1010_s11 = sshll.u32 %s1667_s17, 4  ;;  %s1011_s11 = int_to_ptr.hbm [resolvable:$true] %s1010_s11 }
 0x354   :  { %v634_v14 = vpop.permute.xlu1 %633 }
 0x355   :  { %v661_v10 = vpop.permute.xlu0 %660  ;;  %v635_v63 = vperm.slane %v634_v14, %v1340_v23 }
 0x356   :  { %v662_v58 = vperm.slane %v661_v10, %v1340_v23 }
 0x357   :  { %1036 = vmatmul.msk.f32.vlgmr.msra.gmra.mxu3 %vm317_vm8, %v608_v56 }
 0x358   :  { %1038 = vmatmul.msk.f32.vlgmr.msrb.gmra.mxu0 %vm317_vm8, %v662_v58  ;;  %734 = vmatpush.msra.mxu3 %v1315_v15  ;;  %v769_v15 = vld [vmem:[%s1658_s8 + $0x18] sm:$0xff] }
 0x359   :  { %866 = vmatpush.msrb.mxu0 %v849_v59 }
 0x35b   :  { %867 = vmatpush.msrb.mxu0 %v848_v12 }
 0x35c   :  { %v715_v61 = vpop.permute.xlu1 %714 }
 0x35d   :  { %v688_v2 = vpop.permute.xlu0 %687  ;;  %868 = vmatpush.msrb.mxu0 %v847_v16  ;;  %v716_v8 = vperm.slane %v715_v61, %v1340_v23 }
 0x35e   :  { %v689_v5 = vperm.slane %v688_v2, %v1340_v23 }
 0x35f   :  { %1037 = vmatmul.msk.f32.vlgmr.msrb.gmra.mxu3 %vm317_vm8, %v635_v63  ;;  %869 = vmatpush.msrb.mxu0 %v846_v62 }
 0x360   :  { %1039 = vmatmul.msk.f32.vlgmr.msra.gmra.mxu1 %vm317_vm8, %v689_v5  ;;  %833 = vmatpush.msrb.mxu3 %v769_v15 }
 0x361   :  { %936 = vmatpush.msra.mxu1 %v923_v0 }
 0x362   :  { %834 = vmatpush.msrb.mxu3 %v768_v6 }
 0x363   :  { %937 = vmatpush.msra.mxu1 %v922_v29 }
 0x364   :  { %v742_v7 = vpop.permute.xlu1 %741 }
 0x365   :  { %v743_v1 = vperm.slane %v742_v7, %v1340_v23  ;;  %v767_v23 = vld [vmem:[%s1658_s8 + $0x8] sm:$0xff]  ;;  %938 = vmatpush.msra.mxu1 %v921_v32  ;;  %v1066_v32 = vld [vmem:[%s1666_s16] ss:$0 sm:$0xff] }
 0x366   :  { %835 = vmatpush.msrb.mxu3 %v767_v23  ;;  %v917_v23 = vld [vmem:[%s1663_s13 + $0x8] sm:$0xff] }
 0x367   :  { %1040 = vmatmul.msk.f32.vlgmr.msra.gmra.mxu3 %vm317_vm8, %v716_v8  ;;  %1041 = vmatmul.msk.f32.vlgmr.msra.gmra.mxu0 %vm317_vm8, %v743_v1 }
 0x368   :  { %985 = vmatpush.msra.mxu0 %v972_v19  ;;  %836 = vmatpush.msrb.mxu3 %v766_v22  ;;  %v919_v19 = vld [vmem:[%s1663_s13 + $0x18] sm:$0xff] }
 0x369   :  { %939 = vmatpush.msra.mxu1 %v920_v33 }
 0x36a   :  { %986 = vmatpush.msra.mxu0 %v971_v21  ;;  %v918_v21 = vld [vmem:[%s1663_s13 + $0x10] sm:$0xff]  ;;  %961 = vmatpush.msra.mxu3 %v919_v19 }
 0x36c   :  { %987 = vmatpush.msra.mxu0 %v970_v49  ;;  %962 = vmatpush.msra.mxu3 %v918_v21  ;;  %v916_v49 = vld [vmem:[%s1663_s13] sm:$0xff] }
 0x36e   :  { %988 = vmatpush.msra.mxu0 %v969_v24  ;;  %963 = vmatpush.msra.mxu3 %v917_v23 }
 0x36f   :  { %1044 = vmatmul.msk.f32.vlgmr.msrb.gmra.mxu0 %vm117_vm0, %v1278_v9 }
 0x370   :  { %964 = vmatpush.msra.mxu3 %v916_v49 }
 0x3ca   :  { %v574_v26 = vpop.f32.mrf.mxu3 }
 0x3cd   :  { %v97_v60 = vpop.f32.mrf.mxu0 }
 0x3ce   :  { %1043 = vmatmul.msk.f32.vlgmr.msrb.gmra.mxu3 %vm117_vm0, %v97_v60  ;;  %1048 = vmatmul.msk.f32.vlgmr.msra.gmra.mxu0 %vm117_vm0, %v97_v60 }
 0x3d2   :  { %v601_v31 = vpop.f32.mrf.mxu3 }
 0x3d3   :  { %v782_v11 = vrot.slane %v601_v31, 7 }
 0x3d5   :  { %v682_v36 = vpop.f32.mrf.mxu0  ;;  %v783_v13 = vsel %vm302_vm1, %v782_v11, %v574_v26  ;;  %vm1680_vm1 = vcmask 1046534  }
 0x3d6   :  { %v788_v40 = vrot.slane %v682_v36, 4 }
 0x3da   :  { %v628_v35 = vpop.f32.mrf.mxu3 }
 0x3db   :  { %v784_v37 = vrot.slane %v628_v35, 6 }
 0x3dd   :  { %v785_v51 = vsel %vm304_vm2, %v784_v37, %v783_v13  ;;  %v709_v41 = vpop.f32.mrf.mxu1  ;;  %vm1681_vm2 = vcmask 1047559  }
 0x3de   :  { %v790_v43 = vrot.slane %v709_v41, 3 }
 0x3e2   :  { %v655_v53 = vpop.f32.mrf.mxu3 }
 0x3e3   :  { %v786_v38 = vrot.slane %v655_v53, 5 }
 0x3e4   :  { %v763_v39 = vpop.f32.mrf.mxu0 }
 0x3e5   :  { %v787_v34 = vsel %vm306_vm3, %v786_v38, %v785_v51  ;;  %v794_v18 = vrot.slane %v763_v39, 1 }
 0x3e6   :  { %v789_v30 = vsel %vm308_vm4, %v788_v40, %v787_v34 }
 0x3e7   :  { %v791_v57 = vsel %vm310_vm5, %v790_v43, %v789_v30 }
 0x3ea   :  { %v736_v44 = vpop.f32.mrf.mxu3 }
 0x3eb   :  { %v792_v20 = vrot.slane %v736_v44, 2 }
 0x3ec   :  { %v871_v45 = vpop.f32.mrf.mxu0 }
 0x3ed   :  { %v793_v17 = vsel %vm1680_vm1, %v792_v20, %v791_v57  ;;  %v872_v4 = vadd.f32 %v1064_v42, %v871_v45 }
 0x3ee   :  { %v795_v46 = vsel %vm1681_vm2, %v794_v18, %v793_v17 }
 0x3ef   :  { %1042 = vmatmul.msk.f32.vlgmr.msrb.gmra.mxu1 %vm117_vm0, %v795_v46  ;;  %895 = vrot.lane.b32.xlu0 %v872_v4, %s1149_s19 }
 0x3f7   :  { %1046 = vmatmul.msk.f32.vlgmr.msra.gmra.mxu1 %vm117_vm0, %v795_v46  ;;  %911 = vrot.lane.b32.xlu0 %v1278_v9, %s1150_s12 }
 0x44b   :  { %v990_v33 = vpop.f32.mrf.mxu0 }
 0x451   :  { %v838_v3 = vpop.f32.mrf.mxu3 }
 0x461   :  { %v896_v5 = vpop.permute.xlu0 %895 }
 0x469   :  { %v912_v22 = vpop.permute.xlu0 %911 }
 0x46c   :  { %v815_v48 = vpop.f32.mrf.mxu1 }
 0x46d   :  { %v839_v52 = vadd.f32 %v838_v3, %v815_v48 }
 0x46f   :  { %v845_v54 = vadd.f32 %v1065_v47, %v839_v52 }
 0x471   :  { %v874_v55 = vadd.f32 %v872_v4, %v845_v54 }
 0x473   :  { %v1045_v14 = vmul.f32 -1.442695, %v874_v55 }
 0x474   :  { %v941_v0 = vpop.f32.mrf.mxu1 }
 0x475   :  { %1115 = vpow2.f32 %v1045_v14 }
 0x47b   :  { %v1116_v56 = vpop.eup %1115 }
 0x47c   :  { %v878_v10 = vadd.f32 1.0, %v1116_v56 }
 0x47e   :  { %1117 = vrcp.f32 %v878_v10  ;;  %v890_v16 = vand.u32 2147483648, %v878_v10  ;;  %v888_v9 = vand.u32 2147483647, %v878_v10  ;;  %vm884_vm4 = vweird.f32 %v878_v10 }
 0x480   :  { %v891_v63 = vor.u32 1.1754944e-38, %v890_v16  ;;  %vm889_vm8 = vcmp.eq.f32.partialorder %v888_v9, 8.507059e+37 }
 0x484   :  { %v1118_v58 = vpop.eup %1117 }
 0x485   :  { %v880_v59 = vmul.f32 %v1118_v58, %v878_v10  ;;  %vm885_vm3 = vweird.f32 %v1118_v58 }
 0x486   :  { %vm886_vm5 = vmor %vm884_vm4, %vm885_vm3 }
 0x487   :  { %v881_v12 = vsub.f32 1.0, %v880_v59 }
 0x489   :  { %v882_v61 = vmul.f32 %v1118_v58, %v881_v12 }
 0x48b   :  { %v883_v62 = vadd.f32 %v1118_v58, %v882_v61 }
 0x48d   :  { %v887_v2 = vsel %vm886_vm5, %v1118_v58, %v883_v62 }
 0x48e   :  { %v892_v15 = vsel %vm889_vm8, %v891_v63, %v887_v2 }
 0x48f   :  { %v898_v6 = vmul.f32 %v896_v5, %v892_v15  ;;  %v905_v24 = vsub.f32 1.0, %v892_v15  ;;  %v914_v50 = vmul.f32 %v912_v22, %v892_v15 }
 0x491   :  { %900 = vrot.lane.b32.xlu1 %v898_v6, %s1149_s19 }
 0x503   :  { %v901_v7 = vpop.permute.xlu1 %900 }
 0x504   :  { %v903_v8 = vadd.f32 %v901_v7, %v845_v54 }
 0x506   :  { %1119 = vtanh.f32 %v903_v8 }
 0x50c   :  { %v1120_v1 = vpop.eup %1119 }
 0x50d   :  { %907 = vrot.lane.b32.xlu2 %v1120_v1, %s1151_s10 }
 0x567   :  { %v908_v25 = vpop.permute.xlu2 %907 }
 0x568   :  { %v910_v26 = vmul.f32 %v908_v25, %v905_v24 }
 0x56a   :  { %v915_v60 = vadd.f32 %v914_v50, %v910_v26 }
 0x56c   :  { %945 = vrot.lane.b32.xlu1 %v915_v60, %s1151_s10 }
 0x5de   :  { %v946_v27 = vpop.permute.xlu1 %945 }
 0x5df   :  { %v1001_v28 = vsel %vm117_vm0, %v946_v27, 0.0  ;;  %1047 = vmatmul.msk.f32.vlgmr.msra.gmra.mxu3 %vm117_vm0, %v946_v27 }
 0x5e0   :  { %1002 = vst [vmem:[%s1668_s18] sm:$0xff] %v1001_v28 }
 0x662   :  { %v966_v29 = vpop.f32.mrf.mxu3 }
 0x663   :  { %v967_v31 = vadd.f32 %v966_v29, %v941_v0 }
 0x665   :  { %v993_v35 = vadd.f32 %v990_v33, %v967_v31 }
 0x667   :  { %v998_v36 = vadd.f32 %v1066_v32, %v993_v35 }
 0x669   :  { %999 = vst [vmem:[#allocation2] sm:$0xff] %v998_v36 }
 0x66a   :  { %1013 = dma.vmem_to_hbm [thread:$0]  %s1009_s24, 128, %s1011_s11, [#allocation3]  }
 0x66b   :  { %1145 = dma.done.wait [#allocation3], 128  }
 0x66c   :  { %1146 = vsyncadd [#allocation3], 4294967168 }
 0x66d   :  { %1022 = vsyncpa [#allocation3], 1 }

</bundles_post_ra>
